<compile_context>
chip_gen: v7x
topology: tpu7x:2x2x1
jax: 0.10.0
libtpu: 0.0.40
codegen_flags: <defaults>
</compile_context>

<pallas_src>
import functools

import jax
import jax.numpy as jnp
from jax.experimental import pallas as pl
from jax.experimental.pallas import tpu as pltpu

STATE_DIM = 8      # LunarLander-v2 observation dim
HIDDEN = 128
N_ACTIONS = 4
TILE_B = 256       # max rows per grid step (512-1024 also reasonable on v6e)


def _policy_mlp_kernel(x_ref, w_ref, b_ref, logits_ref, act_ref, *, n_actions):
    """3-layer MLP forward + fused greedy-action epilogue on one batch tile.

    x_ref:      (TB, 128)     bf16   states, feature-padded to 128 lanes
    w_ref:      (3, 128, 128) bf16   packed [w1_pad, w2, w3_pad]
    b_ref:      (3, 128)      f32    packed [b1, b2, b3_pad]
    logits_ref: (TB, 128)     f32    lane-dense logits (cols >= n_actions are 0)
    act_ref:    (TB, 1)       int32  greedy action (argmax over real lanes)
    """
    x = x_ref[...]

    # fc1 + ReLU   (MXU bf16 operands, f32 accumulate; VPU work in f32)
    h = jnp.dot(x, w_ref[0], preferred_element_type=jnp.float32)
    h = jnp.maximum(h + b_ref[0:1, :], 0.0)

    # fc2 + ReLU
    h = jnp.dot(h.astype(jnp.bfloat16), w_ref[1],
                preferred_element_type=jnp.float32)
    h = jnp.maximum(h + b_ref[1:2, :], 0.0)

    # fc3 (padded output columns >= n_actions are exactly zero by construction)
    logits = jnp.dot(h.astype(jnp.bfloat16), w_ref[2],
                     preferred_element_type=jnp.float32) + b_ref[2:3, :]
    logits_ref[...] = logits

    # Fused greedy-action epilogue (argmax over the real action lanes).
    # TODO(synk): stochastic Categorical sampling (Gumbel-max via
    # pltpu.prng_random_bits) and the Adam optimizer/backward live outside
    # this forward kernel; greedy argmax is fused here instead.
    lane = jax.lax.broadcasted_iota(jnp.int32, logits.shape, 1)
    valid = lane < n_actions
    masked = jnp.where(valid, logits, -jnp.inf)
    row_max = jnp.max(masked, axis=1, keepdims=True)
    hit = jnp.logical_and(valid, masked == row_max)
    idx = jnp.where(hit, lane.astype(jnp.float32), float(logits.shape[1]))
    act_ref[...] = jnp.min(idx, axis=1, keepdims=True).astype(jnp.int32)


def policy_forward(x, w_slab, b_slab, *, n_actions=N_ACTIONS, tile_b=TILE_B):
    """x: (B, STATE_DIM) f32 -> (logits (B, n_actions) f32, actions (B,) i32)."""
    B, S = x.shape
    H = w_slab.shape[1]

    # Adapt the tile to small batches (sublane multiple of 8) so tiny action
    # steps do not pad/compute a full 256-row tile.
    tile_b = min(tile_b, max(8, ((B + 7) // 8) * 8))
    n_tiles = pl.cdiv(B, tile_b)
    b_pad = n_tiles * tile_b

    # Lane-dense bf16 MXU operand: pad features to H lanes, rows to a tile mult.
    x_p = jnp.zeros((b_pad, H), jnp.bfloat16).at[:B, :S].set(
        x.astype(jnp.bfloat16))

    kernel = functools.partial(_policy_mlp_kernel, n_actions=n_actions)

    logits_p, act_p = pl.pallas_call(
        kernel,
        out_shape=(jax.ShapeDtypeStruct((b_pad, H), jnp.float32),
                   jax.ShapeDtypeStruct((b_pad, 1), jnp.int32)),
        grid=(n_tiles,),
        in_specs=[
            pl.BlockSpec((tile_b, H), lambda i: (i, 0)),
            pl.BlockSpec((3, H, H), lambda i: (0, 0, 0)),   # VMEM-resident weights
            pl.BlockSpec((3, H), lambda i: (0, 0)),          # VMEM-resident biases
        ],
        out_specs=(pl.BlockSpec((tile_b, H), lambda i: (i, 0)),
                   pl.BlockSpec((tile_b, 1), lambda i: (i, 0))),
        compiler_params=pltpu.CompilerParams(
            dimension_semantics=("parallel",)),
    )(x_p, w_slab, b_slab)

    # TODO(synk): for long rollout loops with fixed weights, keep w_slab/b_slab
    # resident across calls via a cross-pallas_call prefetch instead of
    # re-DMAing ~100 KiB each action step.
    return logits_p[:B, :n_actions], act_p[:B, 0]


def init_params(key, state_dim=STATE_DIM, hidden=HIDDEN, n_actions=N_ACTIONS):
    """PyTorch nn.Linear default init: U[-1/sqrt(fan_in), +1/sqrt(fan_in)]."""
    ks = jax.random.split(key, 6)

    def lin(kw, kb, fan_in, fan_out):
        bound = 1.0 / jnp.sqrt(fan_in)
        w = jax.random.uniform(kw, (fan_in, fan_out), jnp.float32, -bound, bound)
        b = jax.random.uniform(kb, (fan_out,), jnp.float32, -bound, bound)
        return w, b

    w1, b1 = lin(ks[0], ks[1], state_dim, hidden)
    w2, b2 = lin(ks[2], ks[3], hidden, hidden)
    w3, b3 = lin(ks[4], ks[5], hidden, n_actions)
    return (w1, b1, w2, b2, w3, b3)


def pack_params(params, state_dim=STATE_DIM, hidden=HIDDEN, n_actions=N_ACTIONS):
    """Pad/pack into one (3,H,H) bf16 weight slab + one (3,H) f32 bias slab."""
    w1, b1, w2, b2, w3, b3 = params
    H = hidden
    w_slab = jnp.zeros((3, H, H), jnp.float32)
    w_slab = w_slab.at[0, :state_dim, :].set(w1)
    w_slab = w_slab.at[1].set(w2)
    w_slab = w_slab.at[2, :, :n_actions].set(w3)
    b_slab = jnp.zeros((3, H), jnp.float32)
    b_slab = b_slab.at[0].set(b1).at[1].set(b2).at[2, :n_actions].set(b3)
    return w_slab.astype(jnp.bfloat16), b_slab


def _reference_bf16(x, w_slab, b_slab, state_dim=STATE_DIM, n_actions=N_ACTIONS):
    """Pure-JAX reference mimicking the kernel math (bf16 MXU, f32 elsewhere)."""
    B = x.shape[0]
    H = w_slab.shape[1]
    xp = jnp.zeros((B, H), jnp.float32).at[:, :state_dim].set(x)
    h = jnp.dot(xp.astype(jnp.bfloat16), w_slab[0],
                preferred_element_type=jnp.float32)
    h = jnp.maximum(h + b_slab[0], 0.0)
    h = jnp.dot(h.astype(jnp.bfloat16), w_slab[1],
                preferred_element_type=jnp.float32)
    h = jnp.maximum(h + b_slab[1], 0.0)
    logits = jnp.dot(h.astype(jnp.bfloat16), w_slab[2],
                     preferred_element_type=jnp.float32) + b_slab[2]
    return logits[:, :n_actions]


def _reference_f32(x, params):
    w1, b1, w2, b2, w3, b3 = params
    h1 = jnp.maximum(x @ w1 + b1, 0.0)
    h2 = jnp.maximum(h1 @ w2 + b2, 0.0)
    return h2 @ w3 + b3


if __name__ == "__main__":
    key = jax.random.PRNGKey(0)
    k_params, k_x = jax.random.split(key)

    params = init_params(k_params)
    w_slab, b_slab = pack_params(params)

    B = 8                                   # small batch of LunarLander states
    x = jax.random.normal(k_x, (B, STATE_DIM), jnp.float32)

    logits, actions = policy_forward(x, w_slab, b_slab)
    jax.block_until_ready((logits, actions))

    assert logits.shape == (B, N_ACTIONS) and logits.dtype == jnp.float32
    assert actions.shape == (B,)

    ref_bf16 = _reference_bf16(x, w_slab, b_slab)
    assert jnp.allclose(logits, ref_bf16, atol=2e-3, rtol=2e-3), \
        "mismatch vs bf16-weight JAX reference"

    ref_f32 = _reference_f32(x, params)
    assert float(jnp.max(jnp.abs(logits - ref_f32))) < 5e-2, \
        "mismatch vs f32 JAX reference (beyond bf16 rounding budget)"

    assert jnp.array_equal(actions, jnp.argmax(logits, axis=1)), \
        "fused greedy-action epilogue mismatch"

    print("KERNEL_OK")
</pallas_src>

<mosaic_0001>
module attributes {stable_mosaic.version = 11 : i64} {
  func.func @_policy_mlp_kernel(%arg0: i32, %arg1: memref<8x128xbf16, #tpu.memory_space<vmem>>, %arg2: memref<3x128x128xbf16, #tpu.memory_space<vmem>>, %arg3: memref<3x128xf32, #tpu.memory_space<vmem>>, %arg4: memref<8x128xf32, #tpu.memory_space<vmem>>, %arg5: memref<8x1xi32, #tpu.memory_space<vmem>>) attributes {dimension_semantics = [#tpu.dimension_semantics<parallel>], iteration_bounds = array<i64: 1>, scalar_prefetch = 0 : i64, scratch_operands = 0 : i64, tpu.core_type = #tpu.core_type<tc>, window_params = [{transform_indices = @transform_0, window_bounds = array<i64: 8, 128>}, {pipeline_mode = #tpu.pipeline_mode<synchronous>, transform_indices = @transform_1, window_bounds = array<i64: 3, 128, 128>}, {pipeline_mode = #tpu.pipeline_mode<synchronous>, transform_indices = @transform_2, window_bounds = array<i64: 3, 128>}, {transform_indices = @transform_3, window_bounds = array<i64: 8, 128>}, {transform_indices = @transform_4, window_bounds = array<i64: 8, 1>}]} {
    %c0 = arith.constant 0 : index
    %c0_0 = arith.constant 0 : index
    %0 = vector.load %arg1[%c0, %c0_0] : memref<8x128xbf16, #tpu.memory_space<vmem>>, vector<8x128xbf16>
    %c0_1 = arith.constant 0 : index
    %c0_2 = arith.constant 0 : index
    %c0_3 = arith.constant 0 : index
    %1 = vector.load %arg2[%c0_1, %c0_2, %c0_3] : memref<3x128x128xbf16, #tpu.memory_space<vmem>>, vector<1x128x128xbf16>
    %2 = vector.shape_cast %1 : vector<1x128x128xbf16> to vector<128x128xbf16>
    %cst = arith.constant dense<0.000000e+00> : vector<8x128xf32>
    %3 = tpu.matmul %0, %2, %cst {dimension_numbers = #tpu.dot_dimension_numbers<[1], [0], [0], [1], [0, 0, 1, 1], [], []>} : vector<8x128xbf16>, vector<128x128xbf16>, vector<8x128xf32> -> vector<8x128xf32>
    %c0_4 = arith.constant 0 : index
    %c0_5 = arith.constant 0 : index
    %4 = vector.load %arg3[%c0_4, %c0_5] : memref<3x128xf32, #tpu.memory_space<vmem>>, vector<1x128xf32>
    %5 = vector.broadcast %4 : vector<1x128xf32> to vector<8x128xf32>
    %6 = arith.addf %3, %5 : vector<8x128xf32>
    %cst_6 = arith.constant 0.000000e+00 : f32
    %7 = vector.broadcast %cst_6 : f32 to vector<8x128xf32>
    %8 = arith.maximumf %6, %7 : vector<8x128xf32>
    %9 = arith.truncf %8 : vector<8x128xf32> to vector<8x128xbf16>
    %c1 = arith.constant 1 : index
    %c0_7 = arith.constant 0 : index
    %c0_8 = arith.constant 0 : index
    %10 = vector.load %arg2[%c1, %c0_7, %c0_8] : memref<3x128x128xbf16, #tpu.memory_space<vmem>>, vector<1x128x128xbf16>
    %11 = vector.shape_cast %10 : vector<1x128x128xbf16> to vector<128x128xbf16>
    %cst_9 = arith.constant dense<0.000000e+00> : vector<8x128xf32>
    %12 = tpu.matmul %9, %11, %cst_9 {dimension_numbers = #tpu.dot_dimension_numbers<[1], [0], [0], [1], [0, 0, 1, 1], [], []>} : vector<8x128xbf16>, vector<128x128xbf16>, vector<8x128xf32> -> vector<8x128xf32>
    %c1_10 = arith.constant 1 : index
    %c0_11 = arith.constant 0 : index
    %13 = vector.load %arg3[%c1_10, %c0_11] : memref<3x128xf32, #tpu.memory_space<vmem>>, vector<1x128xf32>
    %14 = vector.broadcast %13 : vector<1x128xf32> to vector<8x128xf32>
    %15 = arith.addf %12, %14 : vector<8x128xf32>
    %cst_12 = arith.constant 0.000000e+00 : f32
    %16 = vector.broadcast %cst_12 : f32 to vector<8x128xf32>
    %17 = arith.maximumf %15, %16 : vector<8x128xf32>
    %18 = arith.truncf %17 : vector<8x128xf32> to vector<8x128xbf16>
    %c2 = arith.constant 2 : index
    %c0_13 = arith.constant 0 : index
    %c0_14 = arith.constant 0 : index
    %19 = vector.load %arg2[%c2, %c0_13, %c0_14] : memref<3x128x128xbf16, #tpu.memory_space<vmem>>, vector<1x128x128xbf16>
    %20 = vector.shape_cast %19 : vector<1x128x128xbf16> to vector<128x128xbf16>
    %cst_15 = arith.constant dense<0.000000e+00> : vector<8x128xf32>
    %21 = tpu.matmul %18, %20, %cst_15 {dimension_numbers = #tpu.dot_dimension_numbers<[1], [0], [0], [1], [0, 0, 1, 1], [], []>} : vector<8x128xbf16>, vector<128x128xbf16>, vector<8x128xf32> -> vector<8x128xf32>
    %c2_16 = arith.constant 2 : index
    %c0_17 = arith.constant 0 : index
    %22 = vector.load %arg3[%c2_16, %c0_17] : memref<3x128xf32, #tpu.memory_space<vmem>>, vector<1x128xf32>
    %23 = vector.broadcast %22 : vector<1x128xf32> to vector<8x128xf32>
    %24 = arith.addf %21, %23 : vector<8x128xf32>
    %c0_18 = arith.constant 0 : index
    %c0_19 = arith.constant 0 : index
    %25 = vector.load %arg4[%c0_18, %c0_19] : memref<8x128xf32, #tpu.memory_space<vmem>>, vector<8x128xf32>
    tpu.vector_store %arg4[%c0_18, %c0_19], %24 {strides = array<i32>} : memref<8x128xf32, #tpu.memory_space<vmem>>, vector<8x128xf32>,
    %26 = tpu.iota {dimensions = array<i32: 1>} : vector<8x128xi32>
    %c4_i32 = arith.constant 4 : i32
    %27 = vector.broadcast %c4_i32 : i32 to vector<8x128xi32>
    %28 = arith.cmpi slt, %26, %27 : vector<8x128xi32>
    %cst_20 = arith.constant 0xFF800000 : f32
    %29 = vector.broadcast %cst_20 : f32 to vector<8x128xf32>
    %30 = arith.select %28, %24, %29 : vector<8x128xi1>, vector<8x128xf32>
    %cst_21 = arith.constant dense<0xFF800000> : vector<8xf32>
    %31 = vector.multi_reduction <maximumf>, %30, %cst_21 [1] : vector<8x128xf32> to vector<8xf32>
    %32 = vector.shape_cast %31 : vector<8xf32> to vector<8x1xf32>
    %33 = vector.broadcast %32 : vector<8x1xf32> to vector<8x128xf32>
    %34 = arith.cmpf oeq, %30, %33 : vector<8x128xf32>
    %35 = arith.andi %28, %34 : vector<8x128xi1>
    %36 = arith.sitofp %26 : vector<8x128xi32> to vector<8x128xf32>
    %cst_22 = arith.constant 1.280000e+02 : f32
    %37 = vector.broadcast %cst_22 : f32 to vector<8x128xf32>
    %38 = arith.select %35, %36, %37 : vector<8x128xi1>, vector<8x128xf32>
    %cst_23 = arith.constant dense<0x7F800000> : vector<8xf32>
    %39 = vector.multi_reduction <minimumf>, %38, %cst_23 [1] : vector<8x128xf32> to vector<8xf32>
    %40 = vector.shape_cast %39 : vector<8xf32> to vector<8x1xf32>
    %41 = arith.fptosi %40 : vector<8x1xf32> to vector<8x1xi32>
    %c0_24 = arith.constant 0 : index
    %c0_25 = arith.constant 0 : index
    %42 = vector.load %arg5[%c0_24, %c0_25] : memref<8x1xi32, #tpu.memory_space<vmem>>, vector<8x1xi32>
    tpu.vector_store %arg5[%c0_24, %c0_25], %41 {strides = array<i32>} : memref<8x1xi32, #tpu.memory_space<vmem>>, vector<8x1xi32>,
    return
  }
  func.func @transform_0(%arg0: i32) -> (i32, i32) {
    %c0_i32 = arith.constant 0 : i32
    %c0_i32_0 = arith.constant 0 : i32
    return %arg0, %c0_i32 : i32, i32
  }
  func.func @transform_1(%arg0: i32) -> (i32, i32, i32) {
    %c0_i32 = arith.constant 0 : i32
    %c0_i32_0 = arith.constant 0 : i32
    %c0_i32_1 = arith.constant 0 : i32
    %c0_i32_2 = arith.constant 0 : i32
    return %c0_i32, %c0_i32_0, %c0_i32_1 : i32, i32, i32
  }
  func.func @transform_2(%arg0: i32) -> (i32, i32) {
    %c0_i32 = arith.constant 0 : i32
    %c0_i32_0 = arith.constant 0 : i32
    %c0_i32_1 = arith.constant 0 : i32
    return %c0_i32, %c0_i32_0 : i32, i32
  }
  func.func @transform_3(%arg0: i32) -> (i32, i32) {
    %c0_i32 = arith.constant 0 : i32
    %c0_i32_0 = arith.constant 0 : i32
    return %arg0, %c0_i32 : i32, i32
  }
  func.func @transform_4(%arg0: i32) -> (i32, i32) {
    %c0_i32 = arith.constant 0 : i32
    %c0_i32_0 = arith.constant 0 : i32
    return %arg0, %c0_i32 : i32, i32
  }
}

</mosaic_0001>

<bundles_post_ra>
// kernel: tpu_custom_call.1
= control target key start
LH: loop header
LB: loop body
LE: loop exit
PB: predicated region body
PF: predicated region fallthrough
CT: control target
= control target key end

     0   :  { %10 = vsyncpa [#allocation3], 0  ;;  %s750_s0 = inlined_call_operand.hbm [shape: bf16[8,128], index: 0, kind: input, shape index: {}]   ;;  %s751_s1 = inlined_call_operand.hbm [shape: bf16[3,128,128], index: 1, kind: input, shape index: {}]   ;;  %s752_s2 = inlined_call_operand.vmem [shape: f32[3,128], index: 2, kind: input, shape index: {}]   ;;  %s753_s3 = inlined_call_operand.hbm [shape: f32[8,128], index: 3, kind: output, shape index: {0}]   ;;  %s754_s4 = inlined_call_operand.vmem [shape: s32[8,1], index: 4, kind: output, shape index: {1}]  }
   0x1   :  { %11 = vsyncpa [#allocation6], 0 }
   0x2   :  { %12 = vsyncpa [#allocation4], 0  ;;  %s633_s15 = smov [#allocation2]   ;;  %s634_s17 = smov [#allocation5]  }
   0x3   :  { %s19_s16 = sshll.u32 %s633_s15, 4  ;;  %s28_s18 = sshll.u32 %s634_s17, 4  ;;  %s20_s16 = int_to_ptr.vmem [resolvable:$true] %s19_s16  ;;  %s665_s18 = int_to_ptr.vmem [resolvable:$true] %s28_s18 }
   0x4   :  { %s561_s21 = scalar_lea.hbm %s750_s0, 64 }
   0x5   :  { %p562_p0 = scmp.ne.s32.totalorder %s750_s0, %s561_s21  ;;  %p565_p1 = scmp.lt.u32.totalorder %s561_s21, %s750_s0 }
   0x7   :  { %p567_p2 = pnand %p565_p1, %p562_p0 }
   0x9   :  { %570 = shalt.err (!%p567_p2)
}
   0xa   :  { %s571_s26 = scalar_lea.vmem %s20_s16, 64  ;;  %p576_p4 = scmp.lt.s32.totalorder %s20_s16, %s20_s16 }
   0xb   :  { %p572_p3 = scmp.ne.s32.totalorder %s20_s16, %s571_s26  ;;  %p577_p5 = scmp.lt.s32.totalorder %s571_s26, %s571_s26 }
   0xd   :  { %p578_p6 = por %p577_p5, %p576_p4 }
   0xf   :  { %p579_p7 = pnand %p578_p6, %p572_p3 }
  0x11   :  { %582 = shalt.err (!%p579_p7)
}
  0x12   :  { %22 = dma.hbm_to_vmem [thread:$0]  %s750_s0, 64, %s20_s16, [#allocation3]  }
  0x13   :  { %s583_s5 = scalar_lea.hbm %s751_s1, 3072 }
  0x14   :  { %p584_p8 = scmp.ne.s32.totalorder %s751_s1, %s583_s5  ;;  %p587_p9 = scmp.lt.u32.totalorder %s583_s5, %s751_s1 }
  0x16   :  { %p589_p10 = pnand %p587_p9, %p584_p8 }
  0x18   :  { %592 = shalt.err (!%p589_p10)
}
  0x19   :  { %s593_s10 = scalar_lea.vmem %s665_s18, 3072  ;;  %p598_p12 = scmp.lt.s32.totalorder %s665_s18, %s665_s18 }
  0x1a   :  { %p594_p11 = scmp.ne.s32.totalorder %s665_s18, %s593_s10  ;;  %p599_p13 = scmp.lt.s32.totalorder %s593_s10, %s593_s10 }
  0x1c   :  { %p600_p0 = por %p599_p13, %p598_p12 }
  0x1e   :  { %p601_p1 = pnand %p600_p0, %p594_p11 }
  0x20   :  { %604 = shalt.err (!%p601_p1)
}
  0x21   :  { %s635_s0 = smov 64   ;;  %s636_s11 = smov 4  }
  0x22   :  { %34 = dma.hbm_to_vmem [thread:$0]  %s751_s1, 3072, %s665_s18, [#allocation6], %s635_s0, %s635_s0, %s636_s11  }
  0x23   :  { %627 = dma.done.wait [#allocation3], 64  }
  0x24   :  { %628 = vsyncadd [#allocation3], 4294967232 }
  0x25   :  { %629 = dma.done.wait [#allocation6], 3072  }
  0x26   :  { %630 = vsyncadd [#allocation6], 4294964224  ;;  %v637_v0 = vmov 0.0   ;;  %vm638_vm0 = vmmov 0   ;;  %v537_v1 = vld [vmem:[#allocation5] sm:$0xff]   ;;  %v538_v2 = vld [vmem:[#allocation5 + $0x8] sm:$0xff]   ;;  %v379_v42 = vlaneseq }
  0x27   :  { %468 = vmatprep.subr.bf16.mxu0 %v637_v0  ;;  %484 = vmatprep.mubr.msk.bf16.mxu0 %vm638_vm0, %v637_v0  ;;  %v539_v3 = vld [vmem:[#allocation5 + $0x10] sm:$0xff]   ;;  %v545_v4 = vld [vmem:[#allocation5 + $0x40] sm:$0xff]   ;;  %v540_v5 = vld [vmem:[#allocation5 + $0x18] sm:$0xff]   ;;  %s639_s19 = smov [#allocation7]  }
  0x28   :  { %488 = vmatprep.subr.bf16.mxu1 %v637_v0  ;;  %504 = vmatprep.mubr.msk.bf16.mxu1 %vm638_vm0, %v637_v0  ;;  %v546_v6 = vld [vmem:[#allocation5 + $0x48] sm:$0xff]   ;;  %v541_v7 = vld [vmem:[#allocation5 + $0x20] sm:$0xff]   ;;  %v547_v8 = vld [vmem:[#allocation5 + $0x50] sm:$0xff]   ;;  %v380_v43 = vand.u32 127, %v379_v42  ;;  %s400_s20 = sshll.u32 %s639_s19, 4  ;;  %s401_s20 = int_to_ptr.vmem [resolvable:$true] %s400_s20 }
  0x29   :  { %469 = vmatpush3.bf16.msra.mxu0 %v537_v1  ;;  %489 = vmatpush3.bf16.msra.mxu1 %v545_v4  ;;  %v542_v9 = vld [vmem:[#allocation5 + $0x28] sm:$0xff]   ;;  %v548_v10 = vld [vmem:[#allocation5 + $0x58] sm:$0xff]   ;;  %v543_v11 = vld [vmem:[#allocation5 + $0x30] sm:$0xff]   ;;  %s605_s21 = scalar_lea.vmem %s401_s20, 128  ;;  %p610_p3 = scmp.lt.s32.totalorder %s401_s20, %s401_s20 }
  0x2a   :  { %470 = vmatprep.subr.bf16.mxu0 %v637_v0  ;;  %490 = vmatprep.subr.bf16.mxu1 %v637_v0  ;;  %v549_v12 = vld [vmem:[#allocation5 + $0x60] sm:$0xff]   ;;  %v544_v13 = vld [vmem:[#allocation5 + $0x38] sm:$0xff]   ;;  %v550_v14 = vld [vmem:[#allocation5 + $0x68] sm:$0xff]   ;;  %vm381_vm1 = vcmp.lt.s32.totalorder %v380_v43, 4  ;;  %v387_v51 = vcvt.s32.f32 %v380_v43  ;;  %p606_p2 = scmp.ne.s32.totalorder %s401_s20, %s605_s21  ;;  %p611_p4 = scmp.lt.s32.totalorder %s605_s21, %s605_s21 }
  0x2b   :  { %v44_v15 = vld [vmem:[#allocation2] sm:$0xf]  ;;  %v551_v16 = vld [vmem:[#allocation5 + $0x70] sm:$0xff]   ;;  %v553_v18 = vld [vmem:[#allocation5 + $0x80] sm:$0xff]  }
  0x2c   :  { %v552_v17 = vld [vmem:[#allocation5 + $0x78] sm:$0xff]   ;;  %v554_v19 = vld [vmem:[#allocation5 + $0x88] sm:$0xff]   ;;  %v555_v20 = vld [vmem:[#allocation5 + $0x90] sm:$0xff]   ;;  %p612_p5 = por %p611_p4, %p610_p3 }
  0x2d   :  { %471 = vmatpush3.bf16.msra.mxu0 %v538_v2  ;;  %491 = vmatpush3.bf16.msra.mxu1 %v546_v6  ;;  %v556_v21 = vld [vmem:[#allocation5 + $0x98] sm:$0xff]   ;;  %v557_v22 = vld [vmem:[#allocation5 + $0xa0] sm:$0xff]   ;;  %v558_v23 = vld [vmem:[#allocation5 + $0xa8] sm:$0xff]  }
  0x2e   :  { %472 = vmatprep.subr.bf16.mxu0 %v637_v0  ;;  %492 = vmatprep.subr.bf16.mxu1 %v637_v0  ;;  %v414_v24 = vld [vmem:[%s752_s2] ss:$0 sm:$0xff]  ;;  %v560_v33 = vld [vmem:[#allocation5 + $0xb8] sm:$0xff]   ;;  %v423_v34 = vld [vmem:[%s752_s2 + $0x1] ss:$0 sm:$0xff]  ;;  %p613_p6 = pnand %p612_p5, %p606_p2 }
  0x2f   :  { %v559_v32 = vld [vmem:[#allocation5 + $0xb0] sm:$0xff]  }
  0x30   :  { %v432_v44 = vld [vmem:[%s752_s2 + $0x2] ss:$0 sm:$0xff] }
  0x31   :  { %473 = vmatpush3.bf16.msra.mxu0 %v539_v3  ;;  %493 = vmatpush3.bf16.msra.mxu1 %v547_v8 }
  0x32   :  { %474 = vmatprep.subr.bf16.mxu0 %v637_v0  ;;  %494 = vmatprep.subr.bf16.mxu1 %v637_v0 }
  0x35   :  { %475 = vmatpush3.bf16.msra.mxu0 %v540_v5  ;;  %495 = vmatpush3.bf16.msra.mxu1 %v548_v10 }
  0x36   :  { %476 = vmatprep.subr.bf16.mxu0 %v637_v0  ;;  %496 = vmatprep.subr.bf16.mxu1 %v637_v0 }
  0x39   :  { %477 = vmatpush3.bf16.msra.mxu0 %v541_v7  ;;  %497 = vmatpush3.bf16.msra.mxu1 %v549_v12 }
  0x3a   :  { %478 = vmatprep.subr.bf16.mxu0 %v637_v0  ;;  %498 = vmatprep.subr.bf16.mxu1 %v637_v0 }
  0x3d   :  { %479 = vmatpush3.bf16.msra.mxu0 %v542_v9  ;;  %499 = vmatpush3.bf16.msra.mxu1 %v550_v14 }
  0x3e   :  { %480 = vmatprep.subr.bf16.mxu0 %v637_v0  ;;  %500 = vmatprep.subr.bf16.mxu1 %v637_v0 }
  0x41   :  { %481 = vmatpush3.bf16.msra.mxu0 %v543_v11  ;;  %501 = vmatpush3.bf16.msra.mxu1 %v551_v16 }
  0x42   :  { %482 = vmatprep.subr.bf16.mxu0 %v637_v0  ;;  %502 = vmatprep.subr.bf16.mxu1 %v637_v0 }
  0x45   :  { %483 = vmatpush3.bf16.msra.mxu0 %v544_v13  ;;  %503 = vmatpush3.bf16.msra.mxu1 %v552_v17 }
  0x46   :  { %508 = vmatprep.subr.bf16.mxu0 %v637_v0 }
  0x48   :  { %485 = vmatmul.mubr.bf16.vlgmr.msra.gmra.mrb[0].mxu0 %v44_v15 }
  0x49   :  { %524 = vmatprep.mubr.msk.bf16.mxu0 %vm638_vm0, %v637_v0  ;;  %509 = vmatpush3.bf16.msra.mxu0 %v553_v18 }
  0x4a   :  { %510 = vmatprep.subr.bf16.mxu0 %v637_v0 }
  0x4d   :  { %511 = vmatpush3.bf16.msra.mxu0 %v554_v19 }
  0x4e   :  { %512 = vmatprep.subr.bf16.mxu0 %v637_v0 }
  0x51   :  { %513 = vmatpush3.bf16.msra.mxu0 %v555_v20 }
  0x52   :  { %514 = vmatprep.subr.bf16.mxu0 %v637_v0 }
  0x55   :  { %515 = vmatpush3.bf16.msra.mxu0 %v556_v21 }
  0x56   :  { %516 = vmatprep.subr.bf16.mxu0 %v637_v0 }
  0x59   :  { %517 = vmatpush3.bf16.msra.mxu0 %v557_v22 }
  0x5a   :  { %518 = vmatprep.subr.bf16.mxu0 %v637_v0 }
  0x5d   :  { %519 = vmatpush3.bf16.msra.mxu0 %v558_v23 }
  0x5e   :  { %520 = vmatprep.subr.bf16.mxu0 %v637_v0 }
  0x61   :  { %521 = vmatpush3.bf16.msra.mxu0 %v559_v32 }
  0x62   :  { %522 = vmatprep.subr.bf16.mxu0 %v637_v0 }
  0x65   :  { %523 = vmatpush3.bf16.msra.mxu0 %v560_v33 }
 0x11b   :  { %v148_v25 = vpop.f32.mrb[0].mxu0 }
 0x11c   :  { %v149_v26 = vadd.f32 %v414_v24, %v148_v25  ;;  %v486_v27 = vpop.f32.mrb[1].mxu0 }
 0x11d   :  { %v151_v28 = vpop.f32.mrb[2].mxu0 }
 0x11e   :  { %v154_v29 = vmax.f32 %v149_v26, 0.0  ;;  %v487_v30 = vpop.f32.mrb[3].mxu0 }
 0x120   :  { %v155_v31 = vpack.c.bf16 %v154_v29, %v154_v29 }
 0x122   :  { %505 = vmatmul.mubr.bf16.vlgmr.msra.gmra.mrb[0].mxu1 %v155_v31 }
 0x1f5   :  { %v260_v35 = vpop.f32.mrb[0].mxu1 }
 0x1f6   :  { %v261_v36 = vadd.f32 %v423_v34, %v260_v35  ;;  %v506_v37 = vpop.f32.mrb[1].mxu1 }
 0x1f7   :  { %v263_v38 = vpop.f32.mrb[2].mxu1 }
 0x1f8   :  { %v266_v39 = vmax.f32 %v261_v36, 0.0  ;;  %v507_v40 = vpop.f32.mrb[3].mxu1 }
 0x1fa   :  { %v267_v41 = vpack.c.bf16 %v266_v39, %v266_v39 }
 0x1fc   :  { %525 = vmatmul.mubr.bf16.vlgmr.msra.gmra.mrb[4].mxu0 %v267_v41 }
 0x2cf   :  { %v372_v45 = vpop.f32.mrb[4].mxu0 }
 0x2d0   :  { %v373_v46 = vadd.f32 %v432_v44, %v372_v45  ;;  %v526_v47 = vpop.f32.mrb[5].mxu0 }
 0x2d1   :  { %v375_v48 = vpop.f32.mrb[6].mxu0 }
 0x2d2   :  { %378 = vst [vmem:[#allocation7] sm:$0xff] %v373_v46  ;;  %v527_v49 = vpop.f32.mrb[7].mxu0  ;;  %v382_v50 = vsel %vm381_vm1, %v373_v46, -inf }
 0x2d3   :  { %383 = vmax.xlane.f32.xlu0 %v382_v50 }
 0x360   :  { %v384_v52 = vpop.xlane.xlu0 %383 }
 0x361   :  { %vm385_vm2 = vcmp.eq.f32.partialorder %v382_v50, %v384_v52 }
 0x362   :  { %vm386_vm3 = vmand %vm381_vm1, %vm385_vm2 }
 0x363   :  { %v388_v53 = vsel %vm386_vm3, %v387_v51, 128.0 }
 0x364   :  { %389 = vmin.xlane.f32.xlu0 %v388_v53 }
 0x365   :  { %616 = shalt.err (!%p613_p6)
}
 0x366   :  { %s617_s23 = scalar_lea.hbm %s753_s3, 128 }
 0x367   :  { %p618_p7 = scmp.ne.s32.totalorder %s753_s3, %s617_s23  ;;  %p621_p8 = scmp.lt.u32.totalorder %s617_s23, %s753_s3 }
 0x369   :  { %p623_p9 = pnand %p621_p8, %p618_p7 }
 0x36b   :  { %626 = shalt.err (!%p623_p9)
}
 0x36c   :  { %403 = dma.vmem_to_hbm [thread:$0]  %s401_s20, 128, %s753_s3, [#allocation4]   ;;  %vm392_vm4 = vcmask 7168  }
 0x3f1   :  { %v390_v54 = vpop.xlane.xlu0 %389 }
 0x3f2   :  { %v528_v55 = vtrunc.f32 %v390_v54 }
 0x3f4   :  { %v529_v56 = vcvt.f32.s32 %v528_v55 }
 0x3f6   :  { %393 = vst.msk [vmem:[%s754_s4] sm:$0xff] %vm392_vm4, %v529_v56 }
 0x3f7   :  { %631 = dma.done.wait [#allocation4], 128  }
 0x3f8   :  { %632 = vsyncadd [#allocation4], 4294967168 }
 0x3f9   :  { %411 = vsyncpa [#allocation3], 1 }
 0x3fa   :  { %412 = vsyncpa [#allocation6], 1 }
 0x3fb   :  { %413 = vsyncpa [#allocation4], 1 }

</bundles_post_ra>
